<compile_context>
chip_gen: v7x
topology: tpu7x:2x2x1
jax: 0.10.0
libtpu: 0.0.40
codegen_flags: <defaults>
</compile_context>

<pallas_src>
import math

import jax
import jax.numpy as jnp
from jax import lax
from jax.experimental import pallas as pl
from jax.experimental.pallas import tpu as pltpu

H1 = 128        # per-branch hidden 1 width (fused layer-1 width = 2 * H1 = 256)
H2 = 64         # per-branch hidden 2 width (fused layer-2 width = 2 * H2 = 128)
OUT_SLAB = 128  # lane-dense packed output width (policy cols [0:O], value col O)


def _round_up(x, m):
    return (x + m - 1) // m * m


def _actor_critic_kernel(x_ref, w1_ref, b1_ref, w2_ref, b2_ref, w3_ref, b3_ref, out_ref):
    """One batch tile: three fused MXU passes, lane-masked activations, packed output."""
    wdt = w1_ref.dtype                      # MXU operand dtype (f32 or bf16)
    x = x_ref[...].astype(wdt)

    # ---- layer 1 (fused): cols [0:128] = actor pre-act, [128:256] = critic pre-act ----
    h1 = jnp.dot(x, w1_ref[...], preferred_element_type=jnp.float32) + b1_ref[...]
    lane1 = lax.broadcasted_iota(jnp.int32, h1.shape, 1)
    h1 = jnp.where(lane1 < H1, jnp.tanh(h1), jnp.maximum(h1, 0.0))

    # ---- layer 2 (block-diag fused): cols [0:64] = actor, [64:128] = critic ----
    h2 = jnp.dot(h1.astype(wdt), w2_ref[...], preferred_element_type=jnp.float32) + b2_ref[...]
    lane2 = lax.broadcasted_iota(jnp.int32, h2.shape, 1)
    h2 = jnp.where(lane2 < H2, jnp.tanh(h2), jnp.maximum(h2, 0.0))

    # ---- layer 3 (block-diag fused, lane-dense packed output slab) ----
    out_ref[...] = (
        jnp.dot(h2.astype(wdt), w3_ref[...], preferred_element_type=jnp.float32) + b3_ref[...]
    )


def base_actor_critic_forward(state, packed, out_size, *, block_b=256):
    """state: (B, input_size) f32. packed: fused params from pack_params().
    Returns (policy (B, out_size), value (B, 1))."""
    B, I = state.shape
    assert out_size + 1 <= OUT_SLAB, "packed output slab is 128 lanes wide"

    # Batch tile: big enough to fill MXU sublanes, but never larger than the (8-padded) batch.
    tb = min(block_b, _round_up(B, 8))
    Bp = _round_up(B, tb)
    if Bp != B:
        state = jnp.pad(state, ((0, Bp - B), (0, 0)))
    grid = (Bp // tb,)

    def resident(shape):
        # Weights/biases: full-array block, constant index -> stays VMEM-resident across steps.
        return pl.BlockSpec(shape, lambda i: (0, 0))

    out = pl.pallas_call(
        _actor_critic_kernel,
        out_shape=jax.ShapeDtypeStruct((Bp, OUT_SLAB), jnp.float32),
        grid_spec=pltpu.PrefetchScalarGridSpec(
            num_scalar_prefetch=0,
            grid=grid,
            in_specs=[
                pl.BlockSpec((tb, I), lambda i: (i, 0)),       # state: streamed per tile
                resident(packed["w1"].shape), resident(packed["b1"].shape),
                resident(packed["w2"].shape), resident(packed["b2"].shape),
                resident(packed["w3"].shape), resident(packed["b3"].shape),
            ],
            out_specs=pl.BlockSpec((tb, OUT_SLAB), lambda i: (i, 0)),
        ),
        # "parallel" batch axis: shards grid across the two TensorCores on v7x
        # (no-op but harmless on single-TC v5e/v6e). VMEM is tiny here; the default
        # scoped limit is fine even on v7x's 64 MiB.
        compiler_params=pltpu.CompilerParams(dimension_semantics=("parallel",)),
    )(
        state,
        packed["w1"], packed["b1"],
        packed["w2"], packed["b2"],
        packed["w3"], packed["b3"],
    )

    policy = out[:B, :out_size]
    value = out[:B, out_size:out_size + 1]
    return policy, value


# ----------------------------- parameter handling -----------------------------

def xavier_normal(key, fan_in, fan_out):
    # Matches torch.nn.init.xavier_normal_: std = sqrt(2 / (fan_in + fan_out)).
    std = math.sqrt(2.0 / (fan_in + fan_out))
    return std * jax.random.normal(key, (fan_in, fan_out), dtype=jnp.float32)


def init_params(key, input_size, output_size):
    keys = jax.random.split(key, 6)
    return {
        # actor
        "w1a": xavier_normal(keys[0], input_size, H1), "b1a": jnp.zeros((1, H1), jnp.float32),
        "w2a": xavier_normal(keys[1], H1, H2),         "b2a": jnp.zeros((1, H2), jnp.float32),
        "w3a": xavier_normal(keys[2], H2, output_size), "b3a": jnp.zeros((1, output_size), jnp.float32),
        # critic
        "w1c": xavier_normal(keys[3], input_size, H1), "b1c": jnp.zeros((1, H1), jnp.float32),
        "w2c": xavier_normal(keys[4], H1, H2),         "b2c": jnp.zeros((1, H2), jnp.float32),
        "w3c": xavier_normal(keys[5], H2, 1),          "b3c": jnp.zeros((1, 1), jnp.float32),
    }


def pack_params(p, out_size, mxu_dtype=jnp.float32):
    """Fuse actor/critic weights into lane-dense MXU-friendly slabs (done once, outside kernel)."""
    # Layer 1: concat along output axis -> (I, 256).
    w1 = jnp.concatenate([p["w1a"], p["w1c"]], axis=1)
    b1 = jnp.concatenate([p["b1a"], p["b1c"]], axis=1)
    # Layer 2: block-diagonal (256, 128): actor block top-left, critic block bottom-right.
    w2 = jnp.zeros((2 * H1, 2 * H2), jnp.float32)
    w2 = w2.at[:H1, :H2].set(p["w2a"]).at[H1:, H2:].set(p["w2c"])
    b2 = jnp.concatenate([p["b2a"], p["b2c"]], axis=1)
    # Layer 3: (128, 128) slab: actor rows -> cols [0:O], critic rows -> col O, rest zero.
    w3 = jnp.zeros((2 * H2, OUT_SLAB), jnp.float32)
    w3 = w3.at[:H2, :out_size].set(p["w3a"]).at[H2:, out_size:out_size + 1].set(p["w3c"])
    b3 = jnp.zeros((1, OUT_SLAB), jnp.float32)
    b3 = b3.at[:, :out_size].set(p["b3a"]).at[:, out_size:out_size + 1].set(p["b3c"])
    # Only MXU operands (weights) are cast; biases/activations stay f32 (safe on v5e VPU/EUP too).
    return {
        "w1": w1.astype(mxu_dtype), "b1": b1,
        "w2": w2.astype(mxu_dtype), "b2": b2,
        "w3": w3.astype(mxu_dtype), "b3": b3,
    }


def reference_forward(state, p):
    # Pure-JAX reference matching the PyTorch forward (f32 throughout).
    h = jnp.tanh(state @ p["w1a"] + p["b1a"])
    h = jnp.tanh(h @ p["w2a"] + p["b2a"])
    policy = h @ p["w3a"] + p["b3a"]
    c = jnp.maximum(state @ p["w1c"] + p["b1c"], 0.0)
    c = jnp.maximum(c @ p["w2c"] + p["b2c"], 0.0)
    value = c @ p["w3c"] + p["b3c"]
    return policy, value


# TODO(synk): use_noisy_net=True (NoisyLinear) and use_continuous=True (GuaussianAction /
# Normal distribution) branches are not implemented; this kernel covers the default config.

if __name__ == "__main__":
    key = jax.random.PRNGKey(0)
    k_state, k_params = jax.random.split(key)

    batch, input_size, output_size = 8, 32, 4
    state = jax.random.normal(k_state, (batch, input_size), dtype=jnp.float32)
    params = init_params(k_params, input_size, output_size)
    ref_policy, ref_value = reference_forward(state, params)

    # 1) f32 MXU path: exact semantics of the PyTorch module.
    packed_f32 = pack_params(params, output_size, mxu_dtype=jnp.float32)
    policy, value = jax.block_until_ready(
        base_actor_critic_forward(state, packed_f32, output_size)
    )
    assert policy.shape == (batch, output_size)
    assert value.shape == (batch, 1)
    assert jnp.allclose(policy, ref_policy, atol=1e-5, rtol=1e-5)
    assert jnp.allclose(value, ref_value, atol=1e-5, rtol=1e-5)

    # 2) bf16 MXU operands / f32 accumulate (v6e/v7x fast path) — looser tolerance.
    packed_bf16 = pack_params(params, output_size, mxu_dtype=jnp.bfloat16)
    p16, v16 = jax.block_until_ready(
        base_actor_critic_forward(state, packed_bf16, output_size)
    )
    assert jnp.allclose(p16, ref_policy, atol=3e-2, rtol=3e-2)
    assert jnp.allclose(v16, ref_value, atol=3e-2, rtol=3e-2)

    # 3) Multi-step grid + batch padding path (batch=20, tile=8 -> grid of 3, pad to 24).
    state_big = jax.random.normal(jax.random.PRNGKey(1), (20, input_size), dtype=jnp.float32)
    pb, vb = jax.block_until_ready(
        base_actor_critic_forward(state_big, packed_f32, output_size, block_b=8)
    )
    ref_pb, ref_vb = reference_forward(state_big, params)
    assert jnp.allclose(pb, ref_pb, atol=1e-5, rtol=1e-5)
    assert jnp.allclose(vb, ref_vb, atol=1e-5, rtol=1e-5)

    print("KERNEL_OK")
</pallas_src>

<mosaic_0001>
module attributes {stable_mosaic.version = 11 : i64} {
  func.func @_actor_critic_kernel(%arg0: i32, %arg1: memref<8x32xf32, #tpu.memory_space<vmem>>, %arg2: memref<32x256xf32, #tpu.memory_space<vmem>>, %arg3: memref<1x256xf32, #tpu.memory_space<vmem>>, %arg4: memref<256x128xf32, #tpu.memory_space<vmem>>, %arg5: memref<1x128xf32, #tpu.memory_space<vmem>>, %arg6: memref<128x128xf32, #tpu.memory_space<vmem>>, %arg7: memref<1x128xf32, #tpu.memory_space<vmem>>, %arg8: memref<8x128xf32, #tpu.memory_space<vmem>>) attributes {dimension_semantics = [#tpu.dimension_semantics<parallel>], iteration_bounds = array<i64: 1>, scalar_prefetch = 0 : i64, scratch_operands = 0 : i64, tpu.core_type = #tpu.core_type<tc>, window_params = [{transform_indices = @transform_0, window_bounds = array<i64: 8, 32>}, {pipeline_mode = #tpu.pipeline_mode<synchronous>, transform_indices = @transform_1, window_bounds = array<i64: 32, 256>}, {pipeline_mode = #tpu.pipeline_mode<synchronous>, transform_indices = @transform_2, window_bounds = array<i64: 1, 256>}, {pipeline_mode = #tpu.pipeline_mode<synchronous>, transform_indices = @transform_3, window_bounds = array<i64: 256, 128>}, {pipeline_mode = #tpu.pipeline_mode<synchronous>, transform_indices = @transform_4, window_bounds = array<i64: 1, 128>}, {pipeline_mode = #tpu.pipeline_mode<synchronous>, transform_indices = @transform_5, window_bounds = array<i64: 128, 128>}, {pipeline_mode = #tpu.pipeline_mode<synchronous>, transform_indices = @transform_6, window_bounds = array<i64: 1, 128>}, {transform_indices = @transform_7, window_bounds = array<i64: 8, 128>}]} {
    %c0 = arith.constant 0 : index
    %c0_0 = arith.constant 0 : index
    %0 = vector.load %arg1[%c0, %c0_0] : memref<8x32xf32, #tpu.memory_space<vmem>>, vector<8x32xf32>
    %c0_1 = arith.constant 0 : index
    %c0_2 = arith.constant 0 : index
    %1 = vector.load %arg2[%c0_1, %c0_2] : memref<32x256xf32, #tpu.memory_space<vmem>>, vector<32x256xf32>
    %cst = arith.constant dense<0.000000e+00> : vector<8x256xf32>
    %2 = tpu.matmul %0, %1, %cst {dimension_numbers = #tpu.dot_dimension_numbers<[1], [0], [0], [1], [0, 0, 1, 1], [], []>} : vector<8x32xf32>, vector<32x256xf32>, vector<8x256xf32> -> vector<8x256xf32>
    %c0_3 = arith.constant 0 : index
    %c0_4 = arith.constant 0 : index
    %3 = vector.load %arg3[%c0_3, %c0_4] : memref<1x256xf32, #tpu.memory_space<vmem>>, vector<1x256xf32>
    %4 = vector.broadcast %3 : vector<1x256xf32> to vector<8x256xf32>
    %5 = arith.addf %2, %4 : vector<8x256xf32>
    %6 = tpu.iota {dimensions = array<i32: 1>} : vector<8x256xi32>
    %c128_i32 = arith.constant 128 : i32
    %7 = vector.broadcast %c128_i32 : i32 to vector<8x256xi32>
    %8 = arith.cmpi slt, %6, %7 : vector<8x256xi32>
    %9 = math.tanh %5 : vector<8x256xf32>
    %cst_5 = arith.constant 0.000000e+00 : f32
    %10 = vector.broadcast %cst_5 : f32 to vector<8x256xf32>
    %11 = arith.maximumf %5, %10 : vector<8x256xf32>
    %12 = arith.select %8, %9, %11 : vector<8x256xi1>, vector<8x256xf32>
    %c0_6 = arith.constant 0 : index
    %c0_7 = arith.constant 0 : index
    %13 = vector.load %arg4[%c0_6, %c0_7] : memref<256x128xf32, #tpu.memory_space<vmem>>, vector<256x128xf32>
    %cst_8 = arith.constant dense<0.000000e+00> : vector<8x128xf32>
    %14 = tpu.matmul %12, %13, %cst_8 {dimension_numbers = #tpu.dot_dimension_numbers<[1], [0], [0], [1], [0, 0, 1, 1], [], []>} : vector<8x256xf32>, vector<256x128xf32>, vector<8x128xf32> -> vector<8x128xf32>
    %c0_9 = arith.constant 0 : index
    %c0_10 = arith.constant 0 : index
    %15 = vector.load %arg5[%c0_9, %c0_10] : memref<1x128xf32, #tpu.memory_space<vmem>>, vector<1x128xf32>
    %16 = vector.broadcast %15 : vector<1x128xf32> to vector<8x128xf32>
    %17 = arith.addf %14, %16 : vector<8x128xf32>
    %18 = tpu.iota {dimensions = array<i32: 1>} : vector<8x128xi32>
    %c64_i32 = arith.constant 64 : i32
    %19 = vector.broadcast %c64_i32 : i32 to vector<8x128xi32>
    %20 = arith.cmpi slt, %18, %19 : vector<8x128xi32>
    %21 = math.tanh %17 : vector<8x128xf32>
    %cst_11 = arith.constant 0.000000e+00 : f32
    %22 = vector.broadcast %cst_11 : f32 to vector<8x128xf32>
    %23 = arith.maximumf %17, %22 : vector<8x128xf32>
    %24 = arith.select %20, %21, %23 : vector<8x128xi1>, vector<8x128xf32>
    %c0_12 = arith.constant 0 : index
    %c0_13 = arith.constant 0 : index
    %25 = vector.load %arg6[%c0_12, %c0_13] : memref<128x128xf32, #tpu.memory_space<vmem>>, vector<128x128xf32>
    %cst_14 = arith.constant dense<0.000000e+00> : vector<8x128xf32>
    %26 = tpu.matmul %24, %25, %cst_14 {dimension_numbers = #tpu.dot_dimension_numbers<[1], [0], [0], [1], [0, 0, 1, 1], [], []>} : vector<8x128xf32>, vector<128x128xf32>, vector<8x128xf32> -> vector<8x128xf32>
    %c0_15 = arith.constant 0 : index
    %c0_16 = arith.constant 0 : index
    %27 = vector.load %arg7[%c0_15, %c0_16] : memref<1x128xf32, #tpu.memory_space<vmem>>, vector<1x128xf32>
    %28 = vector.broadcast %27 : vector<1x128xf32> to vector<8x128xf32>
    %29 = arith.addf %26, %28 : vector<8x128xf32>
    %c0_17 = arith.constant 0 : index
    %c0_18 = arith.constant 0 : index
    %30 = vector.load %arg8[%c0_17, %c0_18] : memref<8x128xf32, #tpu.memory_space<vmem>>, vector<8x128xf32>
    tpu.vector_store %arg8[%c0_17, %c0_18], %29 {strides = array<i32>} : memref<8x128xf32, #tpu.memory_space<vmem>>, vector<8x128xf32>,
    return
  }
  func.func @transform_0(%arg0: i32) -> (i32, i32) {
    %c0_i32 = arith.constant 0 : i32
    %c0_i32_0 = arith.constant 0 : i32
    return %arg0, %c0_i32 : i32, i32
  }
  func.func @transform_1(%arg0: i32) -> (i32, i32) {
    %c0_i32 = arith.constant 0 : i32
    %c0_i32_0 = arith.constant 0 : i32
    %c0_i32_1 = arith.constant 0 : i32
    return %c0_i32, %c0_i32_0 : i32, i32
  }
  func.func @transform_2(%arg0: i32) -> (i32, i32) {
    %c0_i32 = arith.constant 0 : i32
    %c0_i32_0 = arith.constant 0 : i32
    %c0_i32_1 = arith.constant 0 : i32
    return %c0_i32, %c0_i32_0 : i32, i32
  }
  func.func @transform_3(%arg0: i32) -> (i32, i32) {
    %c0_i32 = arith.constant 0 : i32
    %c0_i32_0 = arith.constant 0 : i32
    %c0_i32_1 = arith.constant 0 : i32
    return %c0_i32, %c0_i32_0 : i32, i32
  }
  func.func @transform_4(%arg0: i32) -> (i32, i32) {
    %c0_i32 = arith.constant 0 : i32
    %c0_i32_0 = arith.constant 0 : i32
    %c0_i32_1 = arith.constant 0 : i32
    return %c0_i32, %c0_i32_0 : i32, i32
  }
  func.func @transform_5(%arg0: i32) -> (i32, i32) {
    %c0_i32 = arith.constant 0 : i32
    %c0_i32_0 = arith.constant 0 : i32
    %c0_i32_1 = arith.constant 0 : i32
    return %c0_i32, %c0_i32_0 : i32, i32
  }
  func.func @transform_6(%arg0: i32) -> (i32, i32) {
    %c0_i32 = arith.constant 0 : i32
    %c0_i32_0 = arith.constant 0 : i32
    %c0_i32_1 = arith.constant 0 : i32
    return %c0_i32, %c0_i32_0 : i32, i32
  }
  func.func @transform_7(%arg0: i32) -> (i32, i32) {
    %c0_i32 = arith.constant 0 : i32
    %c0_i32_0 = arith.constant 0 : i32
    return %arg0, %c0_i32 : i32, i32
  }
}

</mosaic_0001>

<bundles_post_ra>
// kernel: tpu_custom_call.1
= control target key start
LH: loop header
LB: loop body
LE: loop exit
PB: predicated region body
PF: predicated region fallthrough
CT: control target
= control target key end

     0   :  { %12 = vsyncpa [#allocation3], 0  ;;  %s822_s0 = inlined_call_operand.hbm [shape: f32[8,32], index: 0, kind: input, shape index: {}]   ;;  %s823_s1 = inlined_call_operand.hbm [shape: f32[32,256], index: 1, kind: input, shape index: {}]   ;;  %s824_s2 = inlined_call_operand.vmem [shape: f32[1,256], index: 2, kind: input, shape index: {}]   ;;  %s825_s3 = inlined_call_operand.hbm [shape: f32[256,128], index: 3, kind: input, shape index: {}]   ;;  %s826_s4 = inlined_call_operand.vmem [shape: f32[1,128], index: 4, kind: input, shape index: {}]   ;;  %s827_s5 = inlined_call_operand.hbm [shape: f32[128,128], index: 5, kind: input, shape index: {}]   ;;  %s828_s6 = inlined_call_operand.vmem [shape: f32[1,128], index: 6, kind: input, shape index: {}]   ;;  %s829_s7 = inlined_call_operand.hbm [shape: f32[8,128], index: 7, kind: output, shape index: {}]  }
   0x1   :  { %13 = vsyncpa [#allocation6], 0 }
   0x2   :  { %14 = vsyncpa [#allocation9], 0 }
   0x3   :  { %15 = vsyncpa [#allocation4], 0  ;;  %s699_s24 = smov [#allocation5]   ;;  %s581_s28 = scalar_lea.hbm %s823_s1, 1024 }
   0x4   :  { %s31_s25 = sshll.u32 %s699_s24, 4  ;;  %p582_p0 = scmp.ne.s32.totalorder %s823_s1, %s581_s28  ;;  %s32_s25 = int_to_ptr.vmem [resolvable:$true] %s31_s25 }
   0x5   :  { %p585_p1 = scmp.lt.u32.totalorder %s581_s28, %s823_s1 }
   0x7   :  { %p587_p2 = pnand %p585_p1, %p582_p0 }
   0x9   :  { %590 = shalt.err (!%p587_p2)
}
   0xa   :  { %s591_s10 = scalar_lea.vmem %s32_s25, 1024  ;;  %p596_p4 = scmp.lt.s32.totalorder %s32_s25, %s32_s25 }
   0xb   :  { %p592_p3 = scmp.ne.s32.totalorder %s32_s25, %s591_s10  ;;  %p597_p5 = scmp.lt.s32.totalorder %s591_s10, %s591_s10 }
   0xd   :  { %p598_p6 = por %p597_p5, %p596_p4 }
   0xf   :  { %p599_p7 = pnand %p598_p6, %p592_p3 }
  0x11   :  { %602 = shalt.err (!%p599_p7)
}
  0x12   :  { %s700_s11 = smov 256   ;;  %s701_s12 = smov 16  }
  0x13   :  { %37 = dma.hbm_to_vmem [thread:$0]  %s823_s1, 1024, %s32_s25, [#allocation6], %s700_s11, %s700_s11, %s701_s12  }
  0x14   :  { %s702_s15 = smov [#allocation2]   ;;  %s703_s17 = smov [#allocation7]  }
  0x15   :  { %s22_s16 = sshll.u32 %s702_s15, 4  ;;  %s45_s18 = sshll.u32 %s703_s17, 4  ;;  %s23_s16 = int_to_ptr.vmem [resolvable:$true] %s22_s16  ;;  %s46_s18 = int_to_ptr.vmem [resolvable:$true] %s45_s18 }
  0x16   :  { %s603_s21 = scalar_lea.hbm %s822_s0, 128 }
  0x17   :  { %p604_p8 = scmp.ne.s32.totalorder %s822_s0, %s603_s21  ;;  %p607_p9 = scmp.lt.u32.totalorder %s603_s21, %s822_s0 }
  0x19   :  { %p609_p10 = pnand %p607_p9, %p604_p8 }
  0x1b   :  { %612 = shalt.err (!%p609_p10)
}
  0x1c   :  { %s613_s1 = scalar_lea.vmem %s23_s16, 128  ;;  %p618_p12 = scmp.lt.s32.totalorder %s23_s16, %s23_s16 }
  0x1d   :  { %p614_p11 = scmp.ne.s32.totalorder %s23_s16, %s613_s1  ;;  %p619_p13 = scmp.lt.s32.totalorder %s613_s1, %s613_s1 }
  0x1f   :  { %p620_p0 = por %p619_p13, %p618_p12 }
  0x21   :  { %p621_p1 = pnand %p620_p0, %p614_p11 }
  0x23   :  { %624 = shalt.err (!%p621_p1)
}
  0x24   :  { %25 = dma.hbm_to_vmem [thread:$0]  %s822_s0, 128, %s23_s16, [#allocation3]  }
  0x25   :  { %s625_s30 = scalar_lea.hbm %s825_s3, 4096 }
  0x26   :  { %p626_p2 = scmp.ne.s32.totalorder %s825_s3, %s625_s30  ;;  %p629_p3 = scmp.lt.u32.totalorder %s625_s30, %s825_s3 }
  0x28   :  { %p631_p4 = pnand %p629_p3, %p626_p2 }
  0x2a   :  { %634 = shalt.err (!%p631_p4)
}
  0x2b   :  { %s635_s12 = scalar_lea.vmem %s46_s18, 4096  ;;  %p640_p6 = scmp.lt.s32.totalorder %s46_s18, %s46_s18 }
  0x2c   :  { %p636_p5 = scmp.ne.s32.totalorder %s46_s18, %s635_s12  ;;  %p641_p7 = scmp.lt.s32.totalorder %s635_s12, %s635_s12 }
  0x2e   :  { %p642_p8 = por %p641_p7, %p640_p6 }
  0x30   :  { %p643_p9 = pnand %p642_p8, %p636_p5 }
  0x32   :  { %646 = shalt.err (!%p643_p9)
}
  0x33   :  { %s704_s0 = smov 128   ;;  %s705_s13 = smov 8  }
  0x34   :  { %51 = dma.hbm_to_vmem [thread:$0]  %s825_s3, 4096, %s46_s18, [#allocation6], %s704_s0, %s704_s0, %s705_s13  }
  0x35   :  { %s706_s16 = smov [#allocation8]   ;;  %s647_s21 = scalar_lea.hbm %s827_s5, 2048 }
  0x36   :  { %s59_s17 = sshll.u32 %s706_s16, 4  ;;  %p648_p10 = scmp.ne.s32.totalorder %s827_s5, %s647_s21  ;;  %s60_s17 = int_to_ptr.vmem [resolvable:$true] %s59_s17 }
  0x37   :  { %p651_p11 = scmp.lt.u32.totalorder %s647_s21, %s827_s5 }
  0x39   :  { %p653_p12 = pnand %p651_p11, %p648_p10 }
  0x3b   :  { %656 = shalt.err (!%p653_p12)
}
  0x3c   :  { %s657_s1 = scalar_lea.vmem %s60_s17, 2048  ;;  %p662_p0 = scmp.lt.s32.totalorder %s60_s17, %s60_s17 }
  0x3d   :  { %p658_p13 = scmp.ne.s32.totalorder %s60_s17, %s657_s1  ;;  %p663_p1 = scmp.lt.s32.totalorder %s657_s1, %s657_s1 }
  0x3f   :  { %p664_p2 = por %p663_p1, %p662_p0 }
  0x41   :  { %p665_p3 = pnand %p664_p2, %p658_p13 }
  0x43   :  { %668 = shalt.err (!%p665_p3)
}
  0x44   :  { %65 = dma.hbm_to_vmem [thread:$0]  %s827_s5, 2048, %s60_s17, [#allocation9], %s704_s0, %s704_s0, %s705_s13  }
  0x45   :  { %691 = dma.done.wait [#allocation3], 128  }
  0x46   :  { %692 = vsyncadd [#allocation3], 4294967168 }
  0x47   :  { %693 = dma.done.wait [#allocation6], 5120  }
  0x48   :  { %694 = vsyncadd [#allocation6], 4294962176 }
  0x49   :  { %695 = dma.done.wait [#allocation9], 2048  }
  0x4a   :  { %696 = vsyncadd [#allocation9], 4294965248  ;;  %v707_v0 = vmov 0.0   ;;  %v82_v1 = vld [vmem:[#allocation5 + $0x8] sm:$0xff]  ;;  %v84_v2 = vld [vmem:[#allocation5 + $0x18] sm:$0xff]  ;;  %vm101_vm0 = vcmask 261120  }
  0x4b   :  { %169 = vmatprep.mubr.f32.mxu0 %v707_v0  ;;  %v81_v3 = vld [vmem:[#allocation5] sm:$0xff]  ;;  %v501_v4 = vpack.c.bf16 %v84_v2, %v82_v1  ;;  %v83_v5 = vld [vmem:[#allocation5 + $0x10] sm:$0xff]  ;;  %v86_v6 = vld [vmem:[#allocation5 + $0x28] sm:$0xff]  ;;  %v708_v2 = vmov 0.0|0.0   ;;  %vm709_vm1 = vmmov 0   ;;  %s710_s30 = smov [#allocation10]  }
  0x4c   :  { %v88_v7 = vld [vmem:[#allocation5 + $0x38] sm:$0xff]  ;;  %v503_v8 = vpack.c.bf16 %v83_v5, %v81_v3  ;;  %v85_v10 = vld [vmem:[#allocation5 + $0x20] sm:$0xff]  ;;  %v87_v11 = vld [vmem:[#allocation5 + $0x30] sm:$0xff]  ;;  %s400_s8 = sshll.u32 %s710_s30, 4  ;;  %s401_s8 = int_to_ptr.vmem [resolvable:$true] %s400_s8 }
  0x4d   :  { %v505_v9 = vpack.c.bf16 %v88_v7, %v86_v6  ;;  %502 = vmatprep.subr.bf16.mxu0 %v501_v4  ;;  %v203_v12 = vld [vmem:[#allocation7 + $0x80] sm:$0xff]  ;;  %v204_v13 = vld [vmem:[#allocation7 + $0x88] sm:$0xff]  ;;  %v507_v15 = vpack.c.bf16 %v87_v11, %v85_v10  ;;  %v205_v18 = vld [vmem:[#allocation7 + $0x90] sm:$0xff]  ;;  %p674_p5 = scmp.lt.s32.totalorder %s401_s8, %s401_s8 }
  0x4e   :  { %v187_v14 = vld [vmem:[#allocation7] sm:$0xff]  ;;  %504 = vmatpush1.bf16.msra.mxu0 %v503_v8  ;;  %v509_v16 = vpack.c.bf16 %v204_v13, %v203_v12  ;;  %v188_v17 = vld [vmem:[#allocation7 + $0x8] sm:$0xff]  ;;  %v206_v19 = vld [vmem:[#allocation7 + $0x98] sm:$0xff]  ;;  %v91_v12 = vlaneseq }
  0x4f   :  { %506 = vmatprep.subr.bf16.mxu0 %v505_v9  ;;  %v511_v20 = vpack.c.bf16 %v188_v17, %v187_v14  ;;  %v513_v21 = vpack.c.bf16 %v206_v19, %v205_v18  ;;  %v189_v22 = vld [vmem:[#allocation7 + $0x10] sm:$0xff]  ;;  %v190_v23 = vld [vmem:[#allocation7 + $0x18] sm:$0xff]  ;;  %v207_v24 = vld [vmem:[#allocation7 + $0xa0] sm:$0xff] }
  0x50   :  { %510 = vmatprep.subr.bf16.mxu1 %v509_v16  ;;  %v208_v25 = vld [vmem:[#allocation7 + $0xa8] sm:$0xff]  ;;  %v515_v26 = vpack.c.bf16 %v190_v23, %v189_v22  ;;  %v80_v27 = vld [vmem:[#allocation2] sm:$0xff]  ;;  %v191_v29 = vld [vmem:[#allocation7 + $0x20] sm:$0xff]  ;;  %v92_v13 = vshrl.u32 %v91_v12, 7 }
  0x51   :  { %512 = vmatpush3.bf16.msra.mxu1 %v511_v20  ;;  %v517_v28 = vpack.c.bf16 %v208_v25, %v207_v24  ;;  %v192_v30 = vld [vmem:[#allocation7 + $0x28] sm:$0xff]  ;;  %v209_v31 = vld [vmem:[#allocation7 + $0xb0] sm:$0xff]  ;;  %v210_v32 = vld [vmem:[#allocation7 + $0xb8] sm:$0xff] }
  0x52   :  { %508 = vmatpush1.bf16.msra.mxu0 %v507_v15  ;;  %514 = vmatprep.subr.bf16.mxu1 %v513_v21  ;;  %v519_v33 = vpack.c.bf16 %v192_v30, %v191_v29  ;;  %v521_v34 = vpack.c.bf16 %v210_v32, %v209_v31  ;;  %v193_v35 = vld [vmem:[#allocation7 + $0x30] sm:$0xff]  ;;  %v194_v36 = vld [vmem:[#allocation7 + $0x38] sm:$0xff]  ;;  %v211_v37 = vld [vmem:[#allocation7 + $0xc0] sm:$0xff]  ;;  %v93_v14 = vsub.s32 0, %v92_v13  ;;  %v97_v16 = vsub.s32 1, %v92_v13 }
  0x53   :  { %v212_v38 = vld [vmem:[#allocation7 + $0xc8] sm:$0xff]  ;;  %v523_v39 = vpack.c.bf16 %v194_v36, %v193_v35  ;;  %v195_v41 = vld [vmem:[#allocation7 + $0x40] sm:$0xff]  ;;  %v213_v44 = vld [vmem:[#allocation7 + $0xd0] sm:$0xff]  ;;  %541 = vmatprep.subr.bf16.mxu0 %v708_v2 }
  0x54   :  { %v525_v40 = vpack.c.bf16 %v212_v38, %v211_v37  ;;  %v196_v42 = vld [vmem:[#allocation7 + $0x48] sm:$0xff]  ;;  %v214_v45 = vld [vmem:[#allocation7 + $0xd8] sm:$0xff]  ;;  %v197_v47 = vld [vmem:[#allocation7 + $0x50] sm:$0xff] }
  0x55   :  { %411 = vmatmul.mubr.msk.f32.vlgmr.msra.gmra.mrb[0].mxu0 %vm101_vm0, %v80_v27  ;;  %516 = vmatpush3.bf16.msra.mxu1 %v515_v26  ;;  %v527_v43 = vpack.c.bf16 %v196_v42, %v195_v41  ;;  %v529_v46 = vpack.c.bf16 %v214_v45, %v213_v44  ;;  %v198_v48 = vld [vmem:[#allocation7 + $0x58] sm:$0xff]  ;;  %v215_v50 = vld [vmem:[#allocation7 + $0xe0] sm:$0xff]  ;;  %v216_v51 = vld [vmem:[#allocation7 + $0xe8] sm:$0xff]  ;;  %v177_v42 = vand.u32 127, %v91_v12 }
  0x56   :  { %518 = vmatprep.subr.bf16.mxu1 %v517_v28  ;;  %v531_v49 = vpack.c.bf16 %v198_v48, %v197_v47  ;;  %v533_v52 = vpack.c.bf16 %v216_v51, %v215_v50  ;;  %v199_v53 = vld [vmem:[#allocation7 + $0x60] sm:$0xff]  ;;  %v200_v54 = vld [vmem:[#allocation7 + $0x68] sm:$0xff]  ;;  %v217_v56 = vld [vmem:[#allocation7 + $0xf0] sm:$0xff]  ;;  %498 = vmatprep.mubr.msk.f32.mxu0 %vm709_vm1, %v707_v0 }
  0x57   :  { %v535_v55 = vpack.c.bf16 %v200_v54, %v199_v53  ;;  %v218_v57 = vld [vmem:[#allocation7 + $0xf8] sm:$0xff]  ;;  %v201_v58 = vld [vmem:[#allocation7 + $0x70] sm:$0xff]  ;;  %v300_v62 = vld [vmem:[#allocation8] sm:$0xff]  ;;  %vm296_vm2 = vcmp.lt.s32.totalorder %v177_v42, 64 }
  0x58   :  { %v537_v59 = vpack.c.bf16 %v218_v57, %v217_v56  ;;  %v202_v60 = vld [vmem:[#allocation7 + $0x78] sm:$0xff]  ;;  %v301_v63 = vld [vmem:[#allocation8 + $0x8] sm:$0xff]  ;;  %v302_v1 = vld [vmem:[#allocation8 + $0x10] sm:$0xff] }
  0x59   :  { %520 = vmatpush3.bf16.msra.mxu1 %v519_v33  ;;  %v539_v61 = vpack.c.bf16 %v202_v60, %v201_v58  ;;  %v542_v3 = vpack.c.bf16 %v301_v63, %v300_v62  ;;  %v303_v4 = vld [vmem:[#allocation8 + $0x18] sm:$0xff]  ;;  %v304_v6 = vld [vmem:[#allocation8 + $0x20] sm:$0xff]  ;;  %v305_v7 = vld [vmem:[#allocation8 + $0x28] sm:$0xff] }
  0x5a   :  { %522 = vmatprep.subr.bf16.mxu1 %v521_v34  ;;  %v545_v5 = vpack.c.bf16 %v303_v4, %v302_v1  ;;  %v548_v8 = vpack.c.bf16 %v305_v7, %v304_v6  ;;  %v306_v9 = vld [vmem:[#allocation8 + $0x30] sm:$0xff]  ;;  %v307_v10 = vld [vmem:[#allocation8 + $0x38] sm:$0xff]  ;;  %v308_v25 = vld [vmem:[#allocation8 + $0x40] sm:$0xff] }
  0x5b   :  { %543 = vmatpush3.bf16.msra.mxu0 %v542_v3  ;;  %v551_v11 = vpack.c.bf16 %v307_v10, %v306_v9  ;;  %v89_v15 = vld [vmem:[%s824_s2] sm:$0x3]  ;;  %v309_v26 = vld [vmem:[#allocation8 + $0x48] sm:$0xff]  ;;  %v310_v28 = vld [vmem:[#allocation8 + $0x50] sm:$0xff] }
  0x5c   :  { %544 = vmatprep.subr.bf16.mxu0 %v708_v2  ;;  %v94_v17 = vrot.slane %v89_v15, %v93_v14  ;;  %v98_v18 = vrot.slane %v89_v15, %v97_v16  ;;  %v554_v27 = vpack.c.bf16 %v309_v26, %v308_v25  ;;  %v311_v29 = vld [vmem:[#allocation8 + $0x58] sm:$0xff]  ;;  %v312_v31 = vld [vmem:[#allocation8 + $0x60] sm:$0xff]  ;;  %v313_v32 = vld [vmem:[#allocation8 + $0x68] sm:$0xff] }
  0x5d   :  { %524 = vmatpush3.bf16.msra.mxu1 %v523_v39  ;;  %v557_v30 = vpack.c.bf16 %v311_v29, %v310_v28  ;;  %v560_v33 = vpack.c.bf16 %v313_v32, %v312_v31  ;;  %v314_v34 = vld [vmem:[#allocation8 + $0x70] sm:$0xff]  ;;  %v315_v35 = vld [vmem:[#allocation8 + $0x78] sm:$0xff] }
  0x5e   :  { %526 = vmatprep.subr.bf16.mxu1 %v525_v40  ;;  %v563_v36 = vpack.c.bf16 %v315_v35, %v314_v34  ;;  %v412_v38 = vld [vmem:[%s826_s4] ss:$0 sm:$0xff]  ;;  %s669_s4 = scalar_lea.vmem %s401_s8, 128 }
  0x5f   :  { %546 = vmatpush3.bf16.msra.mxu0 %v545_v5  ;;  %v413_v45 = vld [vmem:[%s828_s6] ss:$0 sm:$0xff]  ;;  %p670_p4 = scmp.ne.s32.totalorder %s401_s8, %s669_s4  ;;  %p675_p6 = scmp.lt.s32.totalorder %s669_s4, %s669_s4 }
  0x60   :  { %547 = vmatprep.subr.bf16.mxu0 %v708_v2 }
  0x61   :  { %528 = vmatpush3.bf16.msra.mxu1 %v527_v43  ;;  %p676_p7 = por %p675_p6, %p674_p5 }
  0x62   :  { %530 = vmatprep.subr.bf16.mxu1 %v529_v46 }
  0x63   :  { %549 = vmatpush3.bf16.msra.mxu0 %v548_v8  ;;  %p677_p8 = pnand %p676_p7, %p670_p4 }
  0x64   :  { %550 = vmatprep.subr.bf16.mxu0 %v708_v2 }
  0x65   :  { %532 = vmatpush3.bf16.msra.mxu1 %v531_v49 }
  0x66   :  { %534 = vmatprep.subr.bf16.mxu1 %v533_v52 }
  0x67   :  { %552 = vmatpush3.bf16.msra.mxu0 %v551_v11 }
  0x68   :  { %553 = vmatprep.subr.bf16.mxu0 %v708_v2 }
  0x69   :  { %536 = vmatpush3.bf16.msra.mxu1 %v535_v55 }
  0x6a   :  { %538 = vmatprep.subr.bf16.mxu1 %v537_v59 }
  0x6b   :  { %555 = vmatpush3.bf16.msra.mxu0 %v554_v27 }
  0x6c   :  { %556 = vmatprep.subr.bf16.mxu0 %v708_v2 }
  0x6d   :  { %540 = vmatpush3.bf16.msra.mxu1 %v539_v61 }
  0x6f   :  { %558 = vmatpush3.bf16.msra.mxu0 %v557_v30 }
  0x70   :  { %559 = vmatprep.subr.bf16.mxu0 %v708_v2 }
  0x73   :  { %561 = vmatpush3.bf16.msra.mxu0 %v560_v33 }
  0x74   :  { %562 = vmatprep.subr.bf16.mxu0 %v708_v2 }
  0x77   :  { %564 = vmatpush3.bf16.msra.mxu0 %v563_v36 }
 0x128   :  { %v171_v19 = vpop.f32.mrb[0].mxu0 }
 0x129   :  { %v172_v20 = vadd.f32 %v171_v19, %v94_v17  ;;  %v173_v21 = vpop.f32.mrb[1].mxu0 }
 0x12a   :  { %v174_v22 = vadd.f32 %v173_v21, %v98_v18 }
 0x12b   :  { %577 = vtanh.f32 %v172_v20 }
 0x12c   :  { %v184_v23 = vmax.f32 %v174_v22, 0.0 }
 0x12e   :  { %290 = vmatprep.mubr.f32.mxu1 %v184_v23 }
 0x135   :  { %v578_v24 = vpop.eup %577 }
 0x136   :  { %291 = vmatmul.mubr.f32.vlgmr.msra.gmra.mrb[0].mxu1 %v578_v24 }
 0x209   :  { %v446_v37 = vpop.f32.mrb[0].mxu1 }
 0x20a   :  { %v447_v39 = vpop.f32.mrb[1].mxu1 }
 0x20b   :  { %v448_v40 = vadd.f32 %v447_v39, %v446_v37 }
 0x20d   :  { %v293_v41 = vadd.f32 %v448_v40, %v412_v38 }
 0x20f   :  { %579 = vtanh.f32 %v293_v41  ;;  %v298_v43 = vmax.f32 %v293_v41, 0.0 }
 0x219   :  { %v580_v0 = vpop.eup %579 }
 0x21a   :  { %v299_v44 = vsel %vm296_vm2, %v580_v0, %v298_v43 }
 0x21b   :  { %499 = vmatmul.mubr.f32.vlgmr.msra.gmra.mrb[2].mxu0 %v299_v44 }
 0x2ee   :  { %v389_v46 = vpop.f32.mrb[2].mxu0 }
 0x2ef   :  { %v390_v47 = vadd.f32 %v413_v45, %v389_v46  ;;  %v500_v48 = vpop.f32.mrb[3].mxu0 }
 0x2f1   :  { %393 = vst [vmem:[#allocation10] sm:$0xff] %v390_v47 }
 0x2f2   :  { %680 = shalt.err (!%p677_p8)
}
 0x2f3   :  { %s681_s11 = scalar_lea.hbm %s829_s7, 128 }
 0x2f4   :  { %p682_p9 = scmp.ne.s32.totalorder %s829_s7, %s681_s11  ;;  %p685_p10 = scmp.lt.u32.totalorder %s681_s11, %s829_s7 }
 0x2f6   :  { %p687_p11 = pnand %p685_p10, %p682_p9 }
 0x2f8   :  { %690 = shalt.err (!%p687_p11)
}
 0x2f9   :  { %403 = dma.vmem_to_hbm [thread:$0]  %s401_s8, 128, %s829_s7, [#allocation4]  }
 0x2fa   :  { %697 = dma.done.wait [#allocation4], 128  }
 0x2fb   :  { %698 = vsyncadd [#allocation4], 4294967168 }
 0x2fc   :  { %407 = vsyncpa [#allocation3], 1 }
 0x2fd   :  { %408 = vsyncpa [#allocation6], 1 }
 0x2fe   :  { %409 = vsyncpa [#allocation9], 1 }
 0x2ff   :  { %410 = vsyncpa [#allocation4], 1 }

</bundles_post_ra>
